<compile_context>
chip_gen: v5e
topology: v5e:2x2
jax: 0.10.0
libtpu: 0.0.40
codegen_flags: <defaults>
</compile_context>

<pallas_src>
import functools
import math

import jax
import jax.numpy as jnp
from jax.experimental import pallas as pl
from jax.experimental.pallas import tpu as pltpu


def _u32(v):
    return jnp.asarray(v, dtype=jnp.uint32)


def _is_pow2(n):
    return n > 0 and (n & (n - 1)) == 0


def _pos_encoder_kernel(seed_ref, x_ref, pe_ref, o_ref, *,
                        dm, dropout_p, scale, train):
    """out = dropout(x * sqrt(dm) + pos_enc)   (inverted dropout).

    seed_ref : SMEM scalar-prefetch ref, shape (1,), int32 dropout seed.
    x_ref    : VMEM (bt, tr, lanes) tile of the (reshaped) embeddings.
    pe_ref   : VMEM (1,  tr, lanes) tile of the positional encodings.
    o_ref    : VMEM (bt, tr, lanes) output tile.
    """
    x = x_ref[...]
    if scale:
        x = x * jnp.asarray(math.sqrt(dm), dtype=x.dtype)
    y = x + pe_ref[...]                      # broadcast over the bt leading dim

    if train and dropout_p >= 1.0:           # degenerate p == 1 edge case
        o_ref[...] = jnp.zeros_like(y)
        return

    if train and dropout_p > 0.0:
        bt, tr, lanes = x_ref.shape
        tile_elems = bt * tr * lanes

        # --- Stateless counter-hash dropout (VPU only, interpret-safe) -------
        # Unique 32-bit counter per element: tile_id * tile_elems + in-tile idx.
        # Scalar parts (tile base, seed mix) are computed once per tile.
        tile_id = pl.program_id(0) * pl.num_programs(1) + pl.program_id(1)
        base = tile_id.astype(jnp.uint32) * jnp.uint32(tile_elems)
        seed_mix = seed_ref[0].astype(jnp.uint32) * jnp.uint32(0x85EBCA77)

        row = jax.lax.broadcasted_iota(jnp.int32, y.shape, 1).astype(jnp.uint32)
        lane = jax.lax.broadcasted_iota(jnp.int32, y.shape, 2).astype(jnp.uint32)
        if _is_pow2(lanes):
            rl = (row << int(math.log2(lanes))) | lane
        else:
            rl = row * _u32(lanes) + lane
        if bt > 1:
            bi = jax.lax.broadcasted_iota(jnp.int32, y.shape, 0).astype(jnp.uint32)
            te = tr * lanes
            if _is_pow2(te):
                in_tile = (bi << int(math.log2(te))) + rl
            else:
                in_tile = bi * _u32(te) + rl
        else:
            in_tile = rl

        key = (in_tile + base) ^ seed_mix

        # lowbias32-style mixer: 2 multiplies, 3 xors, 3 shifts.
        h = key ^ (key >> 16)
        h = h * jnp.uint32(0x21F0AAAD)
        h = h ^ (h >> 15)
        h = h * jnp.uint32(0xD35A2D97)
        h = h ^ (h >> 15)

        # Keep iff top-24-bit uniform >= round(p * 2^24).
        thresh = min(int(round(dropout_p * float(1 << 24))), (1 << 24) - 1)
        keep = (h >> 8) >= jnp.uint32(thresh)
        inv_keep = jnp.asarray(1.0 / (1.0 - dropout_p), dtype=y.dtype)
        y = jnp.where(keep, y * inv_keep, jnp.zeros_like(y))

    o_ref[...] = y.astype(o_ref.dtype)


def make_pos_encodings(dm, maxlen, dtype=jnp.float32):
    """Same construction as the PyTorch __init__ (shape (1, maxlen, dm))."""
    pos = jnp.arange(maxlen, dtype=jnp.float32)[:, None]           # (maxlen, 1)
    dim = jnp.arange(dm, dtype=jnp.float32)                        # (dm,)
    values = pos / jnp.power(10000.0, 2.0 * jnp.floor(dim / 2.0) / dm)
    enc = jnp.where((jnp.arange(dm) % 2) == 0, jnp.sin(values), jnp.cos(values))
    return enc[None].astype(dtype)                                 # (1, maxlen, dm)


_TARGET_BLOCK_BYTES = 2 * 1024 * 1024   # ~85% of HBM roofline on all gens;
                                        # 6 x 2 MiB < 16 MiB scoped VMEM (v5e).


def _choose_row_tile(rows, lanes, itemsize, target_bytes=_TARGET_BLOCK_BYTES):
    """Largest sublane-row tile whose bytes stay under target (no row cap)."""
    rows_by_bytes = max(8, target_bytes // max(lanes * itemsize, 1))
    if rows_by_bytes >= rows:
        return rows                          # full dim -> always legal
    return max(8, (rows_by_bytes // 8) * 8)  # partial tiles need 8-row align


def _largest_divisor_le(n, cap):
    cap = max(1, min(n, cap))
    for d in range(cap, 0, -1):
        if n % d == 0:
            return d
    return 1


def positional_encoder(embeddings, pos_encodings, seed=0, *,
                       dropout=0.1, scale=True, train=True):
    """Apply the PositionalEncoder forward pass with a Pallas TPU kernel.

    embeddings    : (B, S, D) float array
    pos_encodings : (1, maxlen, D) float array, maxlen >= S
    """
    B, S, D = embeddings.shape
    pe = pos_encodings[:, :S, :].astype(embeddings.dtype)          # glue slice

    # Lane-dense layout only for small D (avoid hidden relayout copies when D
    # is large); a full-D last block dim is legal even if D % 128 != 0.
    if D % 128 != 0 and D < 128 and (S * D) % 128 == 0:
        rows, lanes = (S * D) // 128, 128
    else:
        rows, lanes = S, D
    x2 = embeddings.reshape(B, rows, lanes)
    pe2 = pe.reshape(1, rows, lanes)

    itemsize = jnp.dtype(embeddings.dtype).itemsize
    tr = _choose_row_tile(rows, lanes, itemsize)
    num_r_tiles = pl.cdiv(rows, tr)

    # If a single row tile covers the slab but is small, pack several batch
    # elements per block so per-step DMA stays large.
    bt = 1
    block_bytes = tr * lanes * itemsize
    if tr == rows and B > 1 and block_bytes < _TARGET_BLOCK_BYTES:
        bt = _largest_divisor_le(B, max(1, _TARGET_BLOCK_BYTES // block_bytes))
    num_b_tiles = pl.cdiv(B, bt)

    # Grid ordering: keep the row axis outermost (pe tile resident across the
    # inner batch axis).  If there is only one row tile, put batch outermost so
    # megacore (v7x, 2 TCs) still splits work; pe is a single block either way.
    if num_r_tiles > 1 or num_b_tiles == 1:
        grid = (num_r_tiles, num_b_tiles)
        x_map = lambda r, b, seed_ref: (b, r, 0)
        pe_map = lambda r, b, seed_ref: (0, r, 0)
    else:
        grid = (num_b_tiles, num_r_tiles)
        x_map = lambda b, r, seed_ref: (b, r, 0)
        pe_map = lambda b, r, seed_ref: (0, r, 0)

    seed_arr = jnp.array([seed], dtype=jnp.int32)
    kernel = functools.partial(_pos_encoder_kernel, dm=D,
                               dropout_p=float(dropout),
                               scale=bool(scale), train=bool(train))

    cost = pl.CostEstimate(
        flops=3 * B * S * D,
        transcendentals=0,
        bytes_accessed=(2 * B * S * D + S * D) * itemsize,
    )

    out = pl.pallas_call(
        kernel,
        out_shape=jax.ShapeDtypeStruct((B, rows, lanes), embeddings.dtype),
        grid_spec=pltpu.PrefetchScalarGridSpec(
            num_scalar_prefetch=1,                 # seed lands in SMEM
            grid=grid,
            in_specs=[
                pl.BlockSpec((bt, tr, lanes), x_map),   # x
                pl.BlockSpec((1, tr, lanes), pe_map),   # pe (batch-broadcast)
            ],
            out_specs=pl.BlockSpec((bt, tr, lanes), x_map),
        ),
        compiler_params=pltpu.CompilerParams(
            dimension_semantics=("parallel", "parallel"),   # megacore-friendly
        ),
        cost_estimate=cost,
    )(seed_arr, x2, pe2)

    return out.reshape(B, S, D)


if __name__ == "__main__":
    # Small shapes consistent with the module: (batch, seq, dm)
    B, S, DM, MAXLEN = 2, 8, 32, 16
    DROPOUT = 0.1

    key = jax.random.PRNGKey(0)
    x = jax.random.normal(key, (B, S, DM), dtype=jnp.float32)
    pe = make_pos_encodings(DM, MAXLEN)

    # Eval-mode pass (dropout disabled) -> deterministic, check vs pure-JAX ref.
    out_eval = positional_encoder(x, pe, seed=0, dropout=DROPOUT,
                                  scale=True, train=False)
    jax.block_until_ready(out_eval)
    ref_eval = x * jnp.float32(math.sqrt(DM)) + pe[:, :S, :]
    assert out_eval.shape == (B, S, DM)
    assert jnp.allclose(out_eval, ref_eval, atol=1e-5, rtol=1e-5), "eval mismatch"

    # Training-mode pass: every output element is 0 (dropped) or ref / (1 - p).
    out_train = positional_encoder(x, pe, seed=1234, dropout=DROPOUT,
                                   scale=True, train=True)
    jax.block_until_ready(out_train)
    assert out_train.shape == (B, S, DM)
    ref_scaled = ref_eval / (1.0 - DROPOUT)
    dropped = out_train == 0.0
    assert bool(jnp.all(dropped | (jnp.abs(out_train - ref_scaled) < 1e-3))), \
        "train-mode mismatch"
    assert bool(jnp.any(dropped)) and not bool(jnp.all(dropped)), \
        "degenerate dropout mask"

    print("KERNEL_OK")
</pallas_src>

<mosaic_0001>
module attributes {stable_mosaic.version = 11 : i64} {
  func.func @_pos_encoder_kernel(%arg0: i32, %arg1: i32, %arg2: memref<1xi32, #tpu.memory_space<smem>>, %arg3: memref<2x2x128xf32, #tpu.memory_space<vmem>>, %arg4: memref<1x2x128xf32, #tpu.memory_space<vmem>>, %arg5: memref<2x2x128xf32, #tpu.memory_space<vmem>>) attributes {dimension_semantics = [#tpu.dimension_semantics<parallel>, #tpu.dimension_semantics<parallel>], iteration_bounds = array<i64: 1, 1>, scalar_prefetch = 1 : i64, scratch_operands = 0 : i64, tpu.core_type = #tpu.core_type<tc>, window_params = [{transform_indices = @transform_0, window_bounds = array<i64: 2, 2, 128>}, {transform_indices = @transform_1, window_bounds = array<i64: 1, 2, 128>}, {transform_indices = @transform_2, window_bounds = array<i64: 2, 2, 128>}]} {
    %c0 = arith.constant 0 : index
    %c0_0 = arith.constant 0 : index
    %c0_1 = arith.constant 0 : index
    %0 = vector.load %arg3[%c0, %c0_0, %c0_1] : memref<2x2x128xf32, #tpu.memory_space<vmem>>, vector<2x2x128xf32>
    %cst = arith.constant 5.65685415 : f32
    %1 = vector.broadcast %cst : f32 to vector<2x2x128xf32>
    %2 = arith.mulf %0, %1 : vector<2x2x128xf32>
    %c0_2 = arith.constant 0 : index
    %c0_3 = arith.constant 0 : index
    %c0_4 = arith.constant 0 : index
    %3 = vector.load %arg4[%c0_2, %c0_3, %c0_4] : memref<1x2x128xf32, #tpu.memory_space<vmem>>, vector<1x2x128xf32>
    %4 = vector.broadcast %3 : vector<1x2x128xf32> to vector<2x2x128xf32>
    %5 = arith.addf %2, %4 : vector<2x2x128xf32>
    %c0_5 = arith.constant 0 : index
    %c0_6 = arith.constant 0 : index
    %c0_7 = arith.constant 0 : index
    %6 = vector.load %arg5[%c0_5, %c0_6, %c0_7] : memref<2x2x128xf32, #tpu.memory_space<vmem>>, vector<2x2x128xf32>
    tpu.vector_store %arg5[%c0_5, %c0_6, %c0_7], %5 {strides = array<i32>} : memref<2x2x128xf32, #tpu.memory_space<vmem>>, vector<2x2x128xf32>,
    return
  }
  func.func @transform_0(%arg0: i32, %arg1: i32, %arg2: memref<1xi32, #tpu.memory_space<smem>>) -> (i32, i32, i32) {
    %c0_i32 = arith.constant 0 : i32
    %c0_i32_0 = arith.constant 0 : i32
    return %arg1, %arg0, %c0_i32 : i32, i32, i32
  }
  func.func @transform_1(%arg0: i32, %arg1: i32, %arg2: memref<1xi32, #tpu.memory_space<smem>>) -> (i32, i32, i32) {
    %c0_i32 = arith.constant 0 : i32
    %c0_i32_0 = arith.constant 0 : i32
    %c0_i32_1 = arith.constant 0 : i32
    return %c0_i32, %arg0, %c0_i32_0 : i32, i32, i32
  }
  func.func @transform_2(%arg0: i32, %arg1: i32, %arg2: memref<1xi32, #tpu.memory_space<smem>>) -> (i32, i32, i32) {
    %c0_i32 = arith.constant 0 : i32
    %c0_i32_0 = arith.constant 0 : i32
    return %arg1, %arg0, %c0_i32 : i32, i32, i32
  }
}

</mosaic_0001>

<bundles_post_ra>
// kernel: tpu_custom_call.1
= control target key start
LH: loop header
LB: loop body
LE: loop exit
PB: predicated region body
PF: predicated region fallthrough
CT: control target
= control target key end

     0   :  { %9 = vsyncpa [#allocation5], 0  ;;  %s147_s0 = inlined_call_operand.<no memory space> [shape: s32[1], index: 0, kind: input, shape index: {}]   ;;  %s148_s1 = inlined_call_operand.hbm [shape: f32[2,2,128], index: 1, kind: input, shape index: {}]   ;;  %s149_s2 = inlined_call_operand.vmem [shape: f32[1,2,128], index: 2, kind: input, shape index: {}]   ;;  %s150_s3 = inlined_call_operand.hbm [shape: f32[2,2,128], index: 3, kind: output, shape index: {}]  }
   0x1   :  { %10 = vsyncpa [#allocation6], 0  ;;  %s15_s14 = sshll.u32 %s148_s1, 4  ;;  %s114_s15 = smov [#allocation4]   ;;  %s16_s14 = int_to_ptr.hbm [resolvable:$true] %s15_s14 }
   0x2   :  { %s17_s16 = sshll.u32 %s114_s15, 4  ;;  %s115_s0 = smov 32   ;;  %s18_s16 = int_to_ptr.vmem [resolvable:$true] %s17_s16 }
   0x3   :  { %s116_s17 = smov 2  }
   0x4   :  { %23 = dma.hbm_to_vmem [thread:$0]  %s16_s14, 64, %s18_s16, [#allocation5], %s115_s0, %s115_s0, %s116_s17  }
   0x5   :  { %110 = dma.done.wait [#allocation5], 64  }
   0x6   :  { %111 = vsyncadd [#allocation5], 4294967232  ;;  %v30_v0 = vld [vmem:[#allocation4] sm:$0x3]  ;;  %v31_v2 = vld [vmem:[#allocation4 + $0x2] sm:$0x3] }
   0x7   :  { %v34_v1 = vld [vmem:[%s149_s2] sm:$0x3]  ;;  %v32_v3 = vmul.f32 5.656854, %v30_v0  ;;  %v33_v4 = vmul.f32 5.656854, %v31_v2 }
   0x8   :  { %s117_s20 = smov [#allocation7]   ;;  %s45_s23 = sshll.u32 %s150_s3, 4  ;;  %s46_s23 = int_to_ptr.hbm [resolvable:$true] %s45_s23 }
   0x9   :  { %s43_s21 = sshll.u32 %s117_s20, 4  ;;  %v35_v5 = vadd.f32 %v34_v1, %v32_v3  ;;  %v36_v6 = vadd.f32 %v34_v1, %v33_v4  ;;  %s44_s21 = int_to_ptr.vmem [resolvable:$true] %s43_s21 }
   0xb   :  { %37 = vst [vmem:[#allocation7] sm:$0x3] %v35_v5 }
   0xc   :  { %38 = vst [vmem:[#allocation7 + $0x2] sm:$0x3] %v36_v6 }
   0xd   :  { %51 = dma.vmem_to_hbm [thread:$0]  %s44_s21, 64, %s46_s23, [#allocation6], %s115_s0, %s115_s0, %s116_s17  }
   0xe   :  { %112 = dma.done.wait [#allocation6], 64  }
   0xf   :  { %113 = vsyncadd [#allocation6], 4294967232 }
  0x10   :  { %56 = vsyncpa [#allocation5], 1 }
  0x11   :  { %57 = vsyncpa [#allocation6], 1 }

</bundles_post_ra>
